<compile_context>
chip_gen: v7x
topology: tpu7x:2x2x1
jax: 0.10.0
libtpu: 0.0.40
codegen_flags: <defaults>
</compile_context>

<pallas_src>
import functools

import jax
import jax.numpy as jnp
from jax import lax
from jax.experimental import pallas as pl
from jax.experimental.pallas import tpu as pltpu


_DEFAULT_BLOCK_M = 1024  # rows per grid step (review: 1024-2048 at K=72 / N=32)


def _gcn_kernel(x_ref, w_ref, b_ref, o_ref):
    # x_ref: (block_m, K) bf16   flattened conv-weight features (streamed)
    # w_ref: (N, K)       bf16   nn.Linear weight, PyTorch (out, in) layout (resident)
    # b_ref: (1, N)       f32    bias (resident)
    # o_ref: (block_m, N) f32    sigmoid(x @ w.T + b)
    acc = lax.dot_general(
        x_ref[...], w_ref[...],
        dimension_numbers=(((1,), (1,)), ((), ())),  # contract K with K; MXU takes RHS transposed
        preferred_element_type=jnp.float32,          # f32 accumulation
    )
    acc = acc + b_ref[...]
    # sigmoid(x) = 1 / (1 + exp(-x)): one EUP exp + one (approx, EUP) reciprocal.
    o_ref[...] = pl.reciprocal(1.0 + jnp.exp(-acc), approx=True)


def _linear_sigmoid(features, lin_weight, lin_bias, *, block_m=_DEFAULT_BLOCK_M):
    """features: (M, K); lin_weight: (N, K); lin_bias: (N,) -> sigmoid(x @ W.T + b): (M, N) f32."""
    M, K = features.shape
    N = lin_weight.shape[0]
    assert lin_weight.shape[1] == K, "linear in_features must equal #conv weight elements"
    assert block_m % 8 == 0, "block_m must be a multiple of 8 (sublane quantum)"

    # bf16 matmul operands (halves the dominant (M, K) HBM stream; native MXU dtype).
    # These casts live under the caller's jit so XLA fuses them with the flatten /
    # producer ops; the weight/bias prep is tiny (no per-call pad pass remains).
    x = features.astype(jnp.bfloat16)
    w = lin_weight.astype(jnp.bfloat16)
    b = lin_bias.astype(jnp.float32).reshape(1, N)

    tm = M if M <= block_m else block_m      # tm == full M, or a multiple of 8
    grid = (pl.cdiv(M, tm),)                 # partial last block handled by masked stores

    return pl.pallas_call(
        _gcn_kernel,
        out_shape=jax.ShapeDtypeStruct((M, N), jnp.float32),
        grid=grid,
        in_specs=[
            pl.BlockSpec((tm, K), lambda i: (i, 0)),   # streamed / double-buffered
            pl.BlockSpec((N, K), lambda i: (0, 0)),    # VMEM-resident across grid
            pl.BlockSpec((1, N), lambda i: (0, 0)),    # VMEM-resident across grid
        ],
        out_specs=pl.BlockSpec((tm, N), lambda i: (i, 0)),
        compiler_params=pltpu.CompilerParams(
            # "parallel" lets v7x's 2 TensorCores split the batch; neutral on v5e/v6e.
            dimension_semantics=("parallel",),
            # Explicit limit with headroom; actual footprint is ~1 MiB even at
            # block_m=2048, so this is safe within v7x's 64 MiB VMEM as well.
            vmem_limit_bytes=32 * 1024 * 1024,
        ),
    )(x, w, b)


@jax.jit
def gcn_net_forward(conv1_weight, lin_weight, lin_bias):
    """GcnNet.forward float path for one conv layer. Returns (1, output_dim) f32 (lane-dense)."""
    feature = conv1_weight.reshape(1, -1)                       # (1, K)
    return _linear_sigmoid(feature, lin_weight, lin_bias)


@functools.partial(jax.jit, static_argnames=("block_m",))
def gcn_net_forward_batched(conv1_weights, lin_weight, lin_bias, *, block_m=_DEFAULT_BLOCK_M):
    """Many conv-weight sets in ONE pallas_call.

    conv1_weights: (M, out_ch, in_ch, kh, kw) -> (M, output_dim).
    M fills the MXU sublane/row dimension and is tiled/pipelined by the grid."""
    M = conv1_weights.shape[0]
    feats = conv1_weights.reshape(M, -1)                        # (M, K)
    return _linear_sigmoid(feats, lin_weight, lin_bias, block_m=block_m)


def gcn_net_forward_module(conv1_weight, lin_weight, lin_bias):
    """Exact module API: returns (output_dim, 1) like the PyTorch forward.
    The lane-hostile (-1, 1) reshape is applied only at this host/API boundary."""
    return gcn_net_forward(conv1_weight, lin_weight, lin_bias).reshape(-1, 1)


if __name__ == "__main__":
    key = jax.random.PRNGKey(0)
    k1, k2, k3, k4 = jax.random.split(key, 4)

    # Conv layer: weight (out_ch=4, in_ch=2, kh=3, kw=3) -> input_dim K = 72.
    out_ch, in_ch, kh, kw = 4, 2, 3, 3
    input_dim = out_ch * in_ch * kh * kw          # 72
    output_dim = 32
    M = 300                                       # batched demo: 3 grid blocks (last one partial) at block_m=128

    conv1_weight = jax.random.normal(k1, (out_ch, in_ch, kh, kw), jnp.float32) * 0.1
    conv1_weights_batched = jax.random.normal(k4, (M, out_ch, in_ch, kh, kw), jnp.float32) * 0.1

    # nn.Linear default init: uniform(+/- 1/sqrt(in_features)).
    bound = 1.0 / (input_dim ** 0.5)
    lin_weight = jax.random.uniform(k2, (output_dim, input_dim), jnp.float32,
                                    minval=-bound, maxval=bound)
    lin_bias = jax.random.uniform(k3, (output_dim,), jnp.float32,
                                  minval=-bound, maxval=bound)

    def ref_forward(feats, w, b, dtype):
        acc = jnp.dot(feats.astype(dtype), w.astype(dtype).T,
                      preferred_element_type=jnp.float32) + b
        return jax.nn.sigmoid(acc)

    # --- single instance (exact module semantics: (output_dim, 1)) ---
    logits = jax.block_until_ready(gcn_net_forward_module(conv1_weight, lin_weight, lin_bias))
    assert logits.shape == (output_dim, 1)
    feat1 = conv1_weight.reshape(1, -1)
    ref1_bf16 = ref_forward(feat1, lin_weight, lin_bias, jnp.bfloat16).reshape(-1, 1)
    ref1_f32 = ref_forward(feat1, lin_weight, lin_bias, jnp.float32).reshape(-1, 1)
    assert jnp.allclose(logits, ref1_bf16, atol=5e-3), "mismatch vs precision-matched reference"
    assert jnp.allclose(logits, ref1_f32, atol=3e-2), "mismatch vs f32 (PyTorch) reference"

    # --- batched: many conv-weight sets, multi-block grid with a partial last block ---
    logits_b = jax.block_until_ready(
        gcn_net_forward_batched(conv1_weights_batched, lin_weight, lin_bias, block_m=128))
    assert logits_b.shape == (M, output_dim)
    feats = conv1_weights_batched.reshape(M, -1)
    refb_bf16 = ref_forward(feats, lin_weight, lin_bias, jnp.bfloat16)
    refb_f32 = ref_forward(feats, lin_weight, lin_bias, jnp.float32)
    assert jnp.allclose(logits_b, refb_bf16, atol=5e-3), "batched mismatch vs precision-matched reference"
    assert jnp.allclose(logits_b, refb_f32, atol=3e-2), "batched mismatch vs f32 (PyTorch) reference"

    print("KERNEL_OK")
</pallas_src>

<mosaic_0001>
module attributes {stable_mosaic.version = 11 : i64} {
  func.func @_gcn_kernel(%arg0: i32, %arg1: memref<1x72xbf16, #tpu.memory_space<vmem>>, %arg2: memref<32x72xbf16, #tpu.memory_space<vmem>>, %arg3: memref<1x32xf32, #tpu.memory_space<vmem>>, %arg4: memref<1x32xf32, #tpu.memory_space<vmem>>) attributes {dimension_semantics = [#tpu.dimension_semantics<parallel>], iteration_bounds = array<i64: 1>, scalar_prefetch = 0 : i64, scratch_operands = 0 : i64, tpu.core_type = #tpu.core_type<tc>, window_params = [{transform_indices = @transform_0, window_bounds = array<i64: 1, 72>}, {pipeline_mode = #tpu.pipeline_mode<synchronous>, transform_indices = @transform_1, window_bounds = array<i64: 32, 72>}, {pipeline_mode = #tpu.pipeline_mode<synchronous>, transform_indices = @transform_2, window_bounds = array<i64: 1, 32>}, {transform_indices = @transform_3, window_bounds = array<i64: 1, 32>}]} {
    %c0 = arith.constant 0 : index
    %c0_0 = arith.constant 0 : index
    %0 = vector.load %arg1[%c0, %c0_0] : memref<1x72xbf16, #tpu.memory_space<vmem>>, vector<1x72xbf16>
    %c0_1 = arith.constant 0 : index
    %c0_2 = arith.constant 0 : index
    %1 = vector.load %arg2[%c0_1, %c0_2] : memref<32x72xbf16, #tpu.memory_space<vmem>>, vector<32x72xbf16>
    %cst = arith.constant dense<0.000000e+00> : vector<1x32xf32>
    %2 = tpu.matmul %0, %1, %cst {dimension_numbers = #tpu.dot_dimension_numbers<[1], [1], [0], [0], [0, 0, 1, 0], [], []>} : vector<1x72xbf16>, vector<32x72xbf16>, vector<1x32xf32> -> vector<1x32xf32>
    %c0_3 = arith.constant 0 : index
    %c0_4 = arith.constant 0 : index
    %3 = vector.load %arg3[%c0_3, %c0_4] : memref<1x32xf32, #tpu.memory_space<vmem>>, vector<1x32xf32>
    %4 = arith.addf %2, %3 : vector<1x32xf32>
    %cst_5 = arith.constant 0.000000e+00 : f32
    %5 = vector.broadcast %cst_5 : f32 to vector<1x32xf32>
    %6 = arith.subf %5, %4 : vector<1x32xf32>
    %7 = math.exp %6 : vector<1x32xf32>
    %cst_6 = arith.constant 1.000000e+00 : f32
    %8 = vector.broadcast %cst_6 : f32 to vector<1x32xf32>
    %9 = arith.addf %8, %7 : vector<1x32xf32>
    %10 = tpu.reciprocal %9 {approx = true} : vector<1x32xf32> -> vector<1x32xf32>
    %c0_7 = arith.constant 0 : index
    %c0_8 = arith.constant 0 : index
    %11 = vector.load %arg4[%c0_7, %c0_8] : memref<1x32xf32, #tpu.memory_space<vmem>>, vector<1x32xf32>
    tpu.vector_store %arg4[%c0_7, %c0_8], %10 {strides = array<i32>} : memref<1x32xf32, #tpu.memory_space<vmem>>, vector<1x32xf32>,
    return
  }
  func.func @transform_0(%arg0: i32) -> (i32, i32) {
    %c0_i32 = arith.constant 0 : i32
    %c0_i32_0 = arith.constant 0 : i32
    return %arg0, %c0_i32 : i32, i32
  }
  func.func @transform_1(%arg0: i32) -> (i32, i32) {
    %c0_i32 = arith.constant 0 : i32
    %c0_i32_0 = arith.constant 0 : i32
    %c0_i32_1 = arith.constant 0 : i32
    return %c0_i32, %c0_i32_0 : i32, i32
  }
  func.func @transform_2(%arg0: i32) -> (i32, i32) {
    %c0_i32 = arith.constant 0 : i32
    %c0_i32_0 = arith.constant 0 : i32
    %c0_i32_1 = arith.constant 0 : i32
    return %c0_i32, %c0_i32_0 : i32, i32
  }
  func.func @transform_3(%arg0: i32) -> (i32, i32) {
    %c0_i32 = arith.constant 0 : i32
    %c0_i32_0 = arith.constant 0 : i32
    return %arg0, %c0_i32 : i32, i32
  }
}

</mosaic_0001>

<bundles_post_ra>
// kernel: gcn_net_forward.1
= control target key start
LH: loop header
LB: loop body
LE: loop exit
PB: predicated region body
PF: predicated region fallthrough
CT: control target
= control target key end

     0   :  { %v150_v1 = vmov 0.0   ;;  %vm32_vm0 = vcmask 588800   ;;  %vm151_vm1 = vmmov 0   ;;  %s197_s0 = inlined_call_operand.vmem [shape: bf16[1,72], index: 0, kind: input, shape index: {}]   ;;  %s198_s1 = inlined_call_operand.vmem [shape: bf16[32,72], index: 1, kind: input, shape index: {}]   ;;  %s199_s2 = inlined_call_operand.vmem [shape: f32[1,32], index: 2, kind: input, shape index: {}]   ;;  %s200_s3 = inlined_call_operand.hbm [shape: f32[1,32], index: 3, kind: output, shape index: {}]  }
   0x1   :  { %v120_v0 = vld [vmem:[%s198_s1] sm:$0xff]   ;;  %109 = vmatprep.subr.bf16.mxu0 %v150_v1  ;;  %113 = vmatprep.mubr.msk.bf16.mxu0 %vm151_vm1, %v150_v1 }
   0x2   :  { %v37_v2 = vsel %vm32_vm0, %v120_v0, 0 }
   0x3   :  { %110 = vmatpush3.bf16.xpose.msra.mxu0 %v37_v2 }
   0x4   :  { %8 = vsyncpa [#allocation3], 0  ;;  %111 = vmatprep.subr.bf16.mxu0 %v150_v1  ;;  %v121_v3 = vld [vmem:[%s198_s1 + $0x8] sm:$0xff]   ;;  %v16_v5 = vld [vmem:[%s197_s0] sm:$0x1]  ;;  %s152_s1 = smov [#allocation2]  }
   0x5   :  { %v40_v4 = vsel %vm32_vm0, %v121_v3, 0  ;;  %v21_v6 = vld [vmem:[%s199_s2] sm:$0x1]  ;;  %s95_s20 = sshll.u32 %s152_s1, 4  ;;  %vm87_vm2 = vcmask 253952   ;;  %s96_s20 = int_to_ptr.vmem [resolvable:$true] %s95_s20 }
   0x6   :  { %s126_s0 = scalar_lea.vmem %s96_s20, 16  ;;  %s130_s2 = scalar_lea.vmem %s96_s20, 32 }
   0x7   :  { %p127_p0 = scmp.ne.s32.totalorder %s96_s20, %s126_s0  ;;  %p131_p1 = scmp.lt.s32.totalorder %s96_s20, %s96_s20 }
   0x8   :  { %p132_p2 = scmp.lt.s32.totalorder %s130_s2, %s126_s0 }
   0xa   :  { %p133_p3 = por %p132_p2, %p131_p1 }
   0xb   :  { %112 = vmatpush3.bf16.xpose.msra.mxu0 %v40_v4 }
   0xc   :  { %p134_p4 = pnand %p133_p3, %p127_p0 }
  0x12   :  { %114 = vmatmul.mubr.msk.bf16.vlgmr.msra.gmra.mrb[0].mxu0 %vm32_vm0, %v16_v5 }
  0xe5   :  { %v76_v7 = vpop.f32.mrb[0].mxu0 }
  0xe6   :  { %v77_v8 = vadd.f32 %v76_v7, %v21_v6  ;;  %v115_v9 = vpop.f32.mrb[1].mxu0 }
  0xe7   :  { %v79_v10 = vpop.f32.mrb[2].mxu0 }
  0xe8   :  { %v82_v11 = vsub.f32 0.0, %v77_v8  ;;  %v116_v12 = vpop.f32.mrb[3].mxu0 }
  0xea   :  { %v83_v13 = vmul.f32 1.442695, %v82_v11 }
  0xec   :  { %122 = vpow2.f32 %v83_v13 }
  0xf6   :  { %v123_v14 = vpop.eup %122 }
  0xf7   :  { %v85_v15 = vadd.f32 1.0, %v123_v14 }
  0xf9   :  { %124 = vrcp.f32 %v85_v15 }
 0x103   :  { %v125_v16 = vpop.eup %124 }
 0x104   :  { %88 = vst.msk [vmem:[#allocation2] sm:$0x1] %vm87_vm2, %v125_v16 }
 0x105   :  { %137 = shalt.err (!%p134_p4)
}
 0x106   :  { %s138_s23 = scalar_lea.hbm %s200_s3, 16 }
 0x107   :  { %p139_p5 = scmp.ne.s32.totalorder %s200_s3, %s138_s23  ;;  %p142_p6 = scmp.lt.u32.totalorder %s138_s23, %s200_s3 }
 0x109   :  { %p144_p7 = pnand %p142_p6, %p139_p5 }
 0x10b   :  { %147 = shalt.err (!%p144_p7)
}
 0x10c   :  { %98 = dma.vmem_to_hbm [thread:$0]  %s96_s20, 16, %s200_s3, [#allocation3]  }
 0x10d   :  { %148 = dma.done.wait [#allocation3], 16  }
 0x10e   :  { %149 = vsyncadd [#allocation3], 4294967280 }
 0x10f   :  { %102 = vsyncpa [#allocation3], 1 }

</bundles_post_ra>
